<compile_context>
chip_gen: v6e
topology: v6e:2x2x1
jax: 0.10.0
libtpu: 0.0.40
codegen_flags: <defaults>
</compile_context>

<pallas_src>
import jax
import jax.numpy as jnp
from jax.experimental import pallas as pl
from jax.experimental.pallas import tpu as pltpu


def _round_up(x, m):
    return ((x + m - 1) // m) * m


def caliope_head_kernel(bert_ref, prev_ref, wt_ref, bt_ref,
                        wcb_ref, wcw_ref, bc_ref, out_ref):
    """One batch tile (TB rows) of the post-BERT CALIOPER head."""
    bert = bert_ref[...]                                   # (TB, H)  native dtype
    # prev is the HBM-dominant tensor; upcast once after load (f32 accumulation
    # everywhere; portable to v5e which has no bf16 VPU).
    prev = prev_ref[...].astype(jnp.float32)               # (TB, L, S)

    # bert_output_transform: Linear(H -> S) on the MXU, f32 accumulate.
    t = jnp.dot(bert, wt_ref[...],
                preferred_element_type=jnp.float32) + bt_ref[...]       # (TB, S)

    # attention = bmm(prev, t.unsqueeze(2)).squeeze(2) -> (TB, L)
    # VPU multiply + XLU lane reduce over S.
    # TODO(synk): if the XLU lane-reduce binds on v7x once DMA time halves, map
    # this reduction onto the MXU via (prev*t).reshape(TB*L, S) @ ones((S, 1)).
    scores = jnp.sum(prev * t[:, None, :], axis=-1)                     # (TB, L)

    # softmax over previous utterances (dim=1); exact divide (HBM-bound, free).
    m = jnp.max(scores, axis=1, keepdims=True)
    e = jnp.exp(scores - m)
    p = e / jnp.sum(e, axis=1, keepdims=True)                           # (TB, L)

    # weighted_sum = bmm(prev^T, attention.unsqueeze(2)).squeeze(2) -> (TB, S)
    weighted = jnp.sum(prev * p[:, :, None], axis=1)                    # (TB, S)

    # dropout: identity at inference.
    # classifier(cat([bert, weighted])) folded into two matmuls against the
    # pre-split classifier weight halves.
    logits = (jnp.dot(bert, wcb_ref[...], preferred_element_type=jnp.float32)
              + jnp.dot(weighted, wcw_ref[...], preferred_element_type=jnp.float32)
              + bc_ref[...])                                            # (TB, n_cls)
    out_ref[...] = logits.astype(out_ref.dtype)


def caliope_head(bert_out, prev_reps, wt, bt, wc, bc, *, block_b=1024):
    """Post-BERT head of CALIOPERWithoutFinalLayer as one batch-gridded
    Pallas call.

    bert_out: (B, H) pooled BERT output (f32 or bf16)
    prev_reps: (B, L, S) previous utterance representations (f32 or bf16)
    wt/bt: bert_output_transform Linear(H -> S)
    wc/bc: classifier Linear(H + S -> n_cls)
    """
    B, H = bert_out.shape
    _, L, S = prev_reps.shape
    n_cls = wc.shape[1]
    assert wc.shape[0] == H + S
    assert prev_reps.shape[0] == B

    # Pre-split classifier weight (tiny copies), biases as 2-D rows.  All
    # weight blocks use full-array extents -> no lane padding anywhere.
    wc_b = wc[:H]                      # (H, n_cls)
    wc_w = wc[H:]                      # (S, n_cls)
    bt2 = bt.reshape(1, S)
    bc2 = bc.reshape(1, n_cls)

    # Batch padding: only to the sublane multiple of the activation dtype
    # (<= 31 dead zero rows), never a full tile.  prev is NOT padded along S.
    itemsize = jnp.dtype(prev_reps.dtype).itemsize
    sub = 8 * max(1, 4 // itemsize)            # 8 (f32) / 16 (bf16) / 32 (int8)
    B_pad = _round_up(B, sub)
    if B_pad != B:
        bert_out = jnp.pad(bert_out, ((0, B_pad - B), (0, 0)))
        prev_reps = jnp.pad(prev_reps, ((0, B_pad - B), (0, 0), (0, 0)))

    # Batch-tile size: cap by a VMEM budget (double-buffered blocks + ~4 f32
    # (L,S) intermediates per row), keep the grid >= 2 when possible so both
    # v7x TensorCores get work, and let the final block be ragged instead of
    # padding B up to a full tile (dead rows are row-wise safe; OOB stores are
    # masked by Pallas).
    row_bytes = 2 * itemsize * (L * S + H) + 2 * 4 * n_cls + 4 * 4 * L * S
    vmem_budget = 16 * 1024 * 1024
    tb_cap = max(sub, vmem_budget // row_bytes)
    TB = min(block_b, tb_cap, B_pad)
    if B_pad >= 2 * sub:                       # grid >= 2 (megacore / v7x 2 TCs)
        TB = min(TB, _round_up(pl.cdiv(B_pad, 2), sub))
    TB = max(sub, (TB // sub) * sub)
    grid = (pl.cdiv(B_pad, TB),)

    out = pl.pallas_call(
        caliope_head_kernel,
        out_shape=jax.ShapeDtypeStruct((B_pad, n_cls), jnp.float32),
        grid_spec=pltpu.PrefetchScalarGridSpec(
            num_scalar_prefetch=0,
            grid=grid,
            in_specs=[
                pl.BlockSpec((TB, H), lambda i: (i, 0)),         # bert tile
                pl.BlockSpec((TB, L, S), lambda i: (i, 0, 0)),   # prev tile (unpadded)
                pl.BlockSpec((H, S), lambda i: (0, 0)),          # wt (resident)
                pl.BlockSpec((1, S), lambda i: (0, 0)),          # bt
                pl.BlockSpec((H, n_cls), lambda i: (0, 0)),      # wc[:H]
                pl.BlockSpec((S, n_cls), lambda i: (0, 0)),      # wc[H:]
                pl.BlockSpec((1, n_cls), lambda i: (0, 0)),      # bc
            ],
            out_specs=pl.BlockSpec((TB, n_cls), lambda i: (i, 0)),
        ),
        compiler_params=pltpu.CompilerParams(
            dimension_semantics=("parallel",),
            vmem_limit_bytes=48 * 1024 * 1024),
    )(bert_out, prev_reps, wt, bt2, wc_b, wc_w, bc2)

    return out[:B]


def bert_stub(params, input_ids, attention_mask):
    # TODO(synk): the external HuggingFace `bert_model` has no Pallas translation
    # here; replaced by a deterministic embed + masked-mean + tanh pooler stand-in
    # (plain JAX glue producing the pooled output `bert_output[1]`).
    x = params["emb"][input_ids]                                   # (B, T, H)
    mask = attention_mask.astype(jnp.float32)[..., None]           # (B, T, 1)
    pooled = (x * mask).sum(axis=1) / jnp.maximum(mask.sum(axis=1), 1.0)
    return jnp.tanh(pooled @ params["wp"] + params["bp"])          # (B, H)


def reference_head(bert_out, prev, wt, bt, wc, bc):
    t = bert_out @ wt + bt
    scores = jnp.einsum("bls,bs->bl", prev, t)
    p = jax.nn.softmax(scores, axis=1)
    weighted = jnp.einsum("bls,bl->bs", prev, p)
    cat = jnp.concatenate([bert_out, weighted], axis=1)
    return cat @ wc + bc


def make_params(key, vocab, H, S):
    ks = jax.random.split(key, 6)
    return dict(
        emb=0.02 * jax.random.normal(ks[0], (vocab, H), jnp.float32),
        wp=0.02 * jax.random.normal(ks[1], (H, H), jnp.float32),
        bp=jnp.zeros((H,), jnp.float32),
        # bert_output_transform: Linear(H -> S)
        wt=0.02 * jax.random.normal(ks[2], (H, S), jnp.float32),
        bt=0.02 * jax.random.normal(ks[3], (S,), jnp.float32),
        # classifier: Linear(H + S -> 2)
        wc=0.02 * jax.random.normal(ks[4], (H + S, 2), jnp.float32),
        bc=0.02 * jax.random.normal(ks[5], (2,), jnp.float32),
    )


if __name__ == "__main__":
    B, T, L = 2, 8, 8          # batch, seq len, #previous utterances
    H, S = 32, 64              # bert_hidden_size, sentence_bert_hidden_size
    VOCAB = 50

    key = jax.random.PRNGKey(0)
    kp, k_ids, k_prev = jax.random.split(key, 3)
    params = make_params(kp, VOCAB, H, S)

    input_ids = jax.random.randint(k_ids, (B, T), 0, VOCAB, dtype=jnp.int32)
    attention_mask = jnp.ones((B, T), jnp.int32).at[:, T - 2:].set(0)
    prev_reps = jax.random.normal(k_prev, (B, L, S), jnp.float32)

    # "bert_model(...)[1]" pooled output (stand-in), plain JAX glue:
    bert_out = bert_stub(params, input_ids, attention_mask)

    # ---- f32 path: exact softmax divide -> tight tolerance ----
    out = caliope_head(bert_out, prev_reps,
                       params["wt"], params["bt"], params["wc"], params["bc"])
    out = jax.block_until_ready(out)
    ref = reference_head(bert_out, prev_reps,
                         params["wt"], params["bt"], params["wc"], params["bc"])
    assert out.shape == (B, 2)
    assert jnp.allclose(out, ref, atol=2e-5, rtol=1e-4), (out, ref)

    # ---- bf16 activation path (halves the dominant HBM read of prev). The
    # kernel upcasts to f32 right after load, so it matches an upcast reference.
    bert_bf = bert_out.astype(jnp.bfloat16)
    prev_bf = prev_reps.astype(jnp.bfloat16)
    out_bf = caliope_head(bert_bf, prev_bf,
                          params["wt"], params["bt"], params["wc"], params["bc"])
    out_bf = jax.block_until_ready(out_bf)
    ref_bf = reference_head(bert_bf.astype(jnp.float32), prev_bf.astype(jnp.float32),
                            params["wt"], params["bt"], params["wc"], params["bc"])
    assert out_bf.shape == (B, 2)
    assert jnp.allclose(out_bf, ref_bf, atol=1e-4, rtol=1e-3), (out_bf, ref_bf)

    print("KERNEL_OK")
</pallas_src>

<mosaic_0001>
module attributes {stable_mosaic.version = 11 : i64} {
  func.func @caliope_head_kernel(%arg0: i32, %arg1: memref<8x32xf32, #tpu.memory_space<vmem>>, %arg2: memref<8x8x64xf32, #tpu.memory_space<vmem>>, %arg3: memref<32x64xf32, #tpu.memory_space<vmem>>, %arg4: memref<1x64xf32, #tpu.memory_space<vmem>>, %arg5: memref<32x2xf32, #tpu.memory_space<vmem>>, %arg6: memref<64x2xf32, #tpu.memory_space<vmem>>, %arg7: memref<1x2xf32, #tpu.memory_space<vmem>>, %arg8: memref<8x2xf32, #tpu.memory_space<vmem>>) attributes {dimension_semantics = [#tpu.dimension_semantics<parallel>], iteration_bounds = array<i64: 1>, scalar_prefetch = 0 : i64, scratch_operands = 0 : i64, tpu.core_type = #tpu.core_type<tc>, window_params = [{transform_indices = @transform_0, window_bounds = array<i64: 8, 32>}, {transform_indices = @transform_1, window_bounds = array<i64: 8, 8, 64>}, {pipeline_mode = #tpu.pipeline_mode<synchronous>, transform_indices = @transform_2, window_bounds = array<i64: 32, 64>}, {pipeline_mode = #tpu.pipeline_mode<synchronous>, transform_indices = @transform_3, window_bounds = array<i64: 1, 64>}, {pipeline_mode = #tpu.pipeline_mode<synchronous>, transform_indices = @transform_4, window_bounds = array<i64: 32, 2>}, {pipeline_mode = #tpu.pipeline_mode<synchronous>, transform_indices = @transform_5, window_bounds = array<i64: 64, 2>}, {pipeline_mode = #tpu.pipeline_mode<synchronous>, transform_indices = @transform_6, window_bounds = array<i64: 1, 2>}, {transform_indices = @transform_7, window_bounds = array<i64: 8, 2>}]} {
    %c0 = arith.constant 0 : index
    %c0_0 = arith.constant 0 : index
    %0 = vector.load %arg1[%c0, %c0_0] : memref<8x32xf32, #tpu.memory_space<vmem>>, vector<8x32xf32>
    %c0_1 = arith.constant 0 : index
    %c0_2 = arith.constant 0 : index
    %c0_3 = arith.constant 0 : index
    %1 = vector.load %arg2[%c0_1, %c0_2, %c0_3] : memref<8x8x64xf32, #tpu.memory_space<vmem>>, vector<8x8x64xf32>
    %c0_4 = arith.constant 0 : index
    %c0_5 = arith.constant 0 : index
    %2 = vector.load %arg3[%c0_4, %c0_5] : memref<32x64xf32, #tpu.memory_space<vmem>>, vector<32x64xf32>
    %cst = arith.constant dense<0.000000e+00> : vector<8x64xf32>
    %3 = tpu.matmul %0, %2, %cst {dimension_numbers = #tpu.dot_dimension_numbers<[1], [0], [0], [1], [0, 0, 1, 1], [], []>} : vector<8x32xf32>, vector<32x64xf32>, vector<8x64xf32> -> vector<8x64xf32>
    %c0_6 = arith.constant 0 : index
    %c0_7 = arith.constant 0 : index
    %4 = vector.load %arg4[%c0_6, %c0_7] : memref<1x64xf32, #tpu.memory_space<vmem>>, vector<1x64xf32>
    %5 = vector.broadcast %4 : vector<1x64xf32> to vector<8x64xf32>
    %6 = arith.addf %3, %5 : vector<8x64xf32>
    %7 = vector.shape_cast %6 : vector<8x64xf32> to vector<8x1x64xf32>
    %8 = vector.broadcast %7 : vector<8x1x64xf32> to vector<8x8x64xf32>
    %9 = arith.mulf %1, %8 : vector<8x8x64xf32>
    %cst_8 = arith.constant dense<0.000000e+00> : vector<8x8xf32>
    %10 = vector.multi_reduction <add>, %9, %cst_8 [2] : vector<8x8x64xf32> to vector<8x8xf32>
    %cst_9 = arith.constant dense<0xFF800000> : vector<8xf32>
    %11 = vector.multi_reduction <maximumf>, %10, %cst_9 [1] : vector<8x8xf32> to vector<8xf32>
    %12 = vector.shape_cast %11 : vector<8xf32> to vector<8x1xf32>
    %13 = vector.broadcast %12 : vector<8x1xf32> to vector<8x8xf32>
    %14 = arith.subf %10, %13 : vector<8x8xf32>
    %15 = math.exp %14 : vector<8x8xf32>
    %cst_10 = arith.constant dense<0.000000e+00> : vector<8xf32>
    %16 = vector.multi_reduction <add>, %15, %cst_10 [1] : vector<8x8xf32> to vector<8xf32>
    %17 = vector.shape_cast %16 : vector<8xf32> to vector<8x1xf32>
    %18 = vector.broadcast %17 : vector<8x1xf32> to vector<8x8xf32>
    %19 = arith.divf %15, %18 : vector<8x8xf32>
    %20 = vector.shape_cast %19 : vector<8x8xf32> to vector<8x8x1xf32>
    %21 = vector.broadcast %20 : vector<8x8x1xf32> to vector<8x8x64xf32>
    %22 = arith.mulf %1, %21 : vector<8x8x64xf32>
    %cst_11 = arith.constant dense<0.000000e+00> : vector<8x64xf32>
    %23 = vector.multi_reduction <add>, %22, %cst_11 [1] : vector<8x8x64xf32> to vector<8x64xf32>
    %c0_12 = arith.constant 0 : index
    %c0_13 = arith.constant 0 : index
    %24 = vector.load %arg5[%c0_12, %c0_13] : memref<32x2xf32, #tpu.memory_space<vmem>>, vector<32x2xf32>
    %cst_14 = arith.constant dense<0.000000e+00> : vector<8x2xf32>
    %25 = tpu.matmul %0, %24, %cst_14 {dimension_numbers = #tpu.dot_dimension_numbers<[1], [0], [0], [1], [0, 0, 1, 1], [], []>} : vector<8x32xf32>, vector<32x2xf32>, vector<8x2xf32> -> vector<8x2xf32>
    %c0_15 = arith.constant 0 : index
    %c0_16 = arith.constant 0 : index
    %26 = vector.load %arg6[%c0_15, %c0_16] : memref<64x2xf32, #tpu.memory_space<vmem>>, vector<64x2xf32>
    %cst_17 = arith.constant dense<0.000000e+00> : vector<8x2xf32>
    %27 = tpu.matmul %23, %26, %cst_17 {dimension_numbers = #tpu.dot_dimension_numbers<[1], [0], [0], [1], [0, 0, 1, 1], [], []>} : vector<8x64xf32>, vector<64x2xf32>, vector<8x2xf32> -> vector<8x2xf32>
    %28 = arith.addf %25, %27 : vector<8x2xf32>
    %c0_18 = arith.constant 0 : index
    %c0_19 = arith.constant 0 : index
    %29 = vector.load %arg7[%c0_18, %c0_19] : memref<1x2xf32, #tpu.memory_space<vmem>>, vector<1x2xf32>
    %30 = vector.broadcast %29 : vector<1x2xf32> to vector<8x2xf32>
    %31 = arith.addf %28, %30 : vector<8x2xf32>
    %c0_20 = arith.constant 0 : index
    %c0_21 = arith.constant 0 : index
    %32 = vector.load %arg8[%c0_20, %c0_21] : memref<8x2xf32, #tpu.memory_space<vmem>>, vector<8x2xf32>
    tpu.vector_store %arg8[%c0_20, %c0_21], %31 {strides = array<i32>} : memref<8x2xf32, #tpu.memory_space<vmem>>, vector<8x2xf32>,
    return
  }
  func.func @transform_0(%arg0: i32) -> (i32, i32) {
    %c0_i32 = arith.constant 0 : i32
    %c0_i32_0 = arith.constant 0 : i32
    return %arg0, %c0_i32 : i32, i32
  }
  func.func @transform_1(%arg0: i32) -> (i32, i32, i32) {
    %c0_i32 = arith.constant 0 : i32
    %c0_i32_0 = arith.constant 0 : i32
    %c0_i32_1 = arith.constant 0 : i32
    return %arg0, %c0_i32, %c0_i32_0 : i32, i32, i32
  }
  func.func @transform_2(%arg0: i32) -> (i32, i32) {
    %c0_i32 = arith.constant 0 : i32
    %c0_i32_0 = arith.constant 0 : i32
    %c0_i32_1 = arith.constant 0 : i32
    return %c0_i32, %c0_i32_0 : i32, i32
  }
  func.func @transform_3(%arg0: i32) -> (i32, i32) {
    %c0_i32 = arith.constant 0 : i32
    %c0_i32_0 = arith.constant 0 : i32
    %c0_i32_1 = arith.constant 0 : i32
    return %c0_i32, %c0_i32_0 : i32, i32
  }
  func.func @transform_4(%arg0: i32) -> (i32, i32) {
    %c0_i32 = arith.constant 0 : i32
    %c0_i32_0 = arith.constant 0 : i32
    %c0_i32_1 = arith.constant 0 : i32
    return %c0_i32, %c0_i32_0 : i32, i32
  }
  func.func @transform_5(%arg0: i32) -> (i32, i32) {
    %c0_i32 = arith.constant 0 : i32
    %c0_i32_0 = arith.constant 0 : i32
    %c0_i32_1 = arith.constant 0 : i32
    return %c0_i32, %c0_i32_0 : i32, i32
  }
  func.func @transform_6(%arg0: i32) -> (i32, i32) {
    %c0_i32 = arith.constant 0 : i32
    %c0_i32_0 = arith.constant 0 : i32
    %c0_i32_1 = arith.constant 0 : i32
    return %c0_i32, %c0_i32_0 : i32, i32
  }
  func.func @transform_7(%arg0: i32) -> (i32, i32) {
    %c0_i32 = arith.constant 0 : i32
    %c0_i32_0 = arith.constant 0 : i32
    return %arg0, %c0_i32 : i32, i32
  }
}

</mosaic_0001>

<bundles_post_ra>
// kernel: tpu_custom_call.1
= control target key start
LH: loop header
LB: loop body
LE: loop exit
PB: predicated region body
PF: predicated region fallthrough
CT: control target
= control target key end

     0   :  { %12 = vsyncpa [#allocation3], 0  ;;  %s927_s24 = smov [#allocation2]   ;;  %s1254_s0 = inlined_call_operand.hbm [shape: f32[8,32], index: 0, kind: input, shape index: {}]   ;;  %s1255_s1 = inlined_call_operand.vmem [shape: f32[8,8,64], index: 1, kind: input, shape index: {}]   ;;  %s1256_s2 = inlined_call_operand.vmem [shape: f32[32,64], index: 2, kind: input, shape index: {}]   ;;  %s1257_s3 = inlined_call_operand.vmem [shape: f32[1,64], index: 3, kind: input, shape index: {}]   ;;  %s1258_s4 = inlined_call_operand.vmem [shape: f32[32,2], index: 4, kind: input, shape index: {}]   ;;  %s1259_s5 = inlined_call_operand.vmem [shape: f32[64,2], index: 5, kind: input, shape index: {}]   ;;  %s1260_s6 = inlined_call_operand.vmem [shape: f32[1,2], index: 6, kind: input, shape index: {}]   ;;  %s1261_s7 = inlined_call_operand.vmem [shape: f32[8,2], index: 7, kind: output, shape index: {}]  }
   0x1   :  { %s19_s25 = sshll.u32 %s927_s24, 4  ;;  %s20_s25 = int_to_ptr.vmem [resolvable:$true] %s19_s25 }
   0x2   :  { %s913_s26 = scalar_lea.vmem %s20_s25, 128  ;;  %p918_p1 = scmp.lt.s32.totalorder %s20_s25, %s20_s25 }
   0x3   :  { %p914_p0 = scmp.ne.s32.totalorder %s20_s25, %s913_s26  ;;  %p919_p2 = scmp.lt.s32.totalorder %s913_s26, %s913_s26 }
   0x5   :  { %p920_p3 = por %p919_p2, %p918_p1 }
   0x7   :  { %p921_p4 = pnand %p920_p3, %p914_p0 }
   0x9   :  { %924 = shalt.err (!%p921_p4)
}
   0xa   :  { %22 = dma.hbm_to_vmem [thread:$0]  %s1254_s0, 128, %s20_s25, [#allocation3]  }
   0xb   :  { %925 = dma.done.wait [#allocation3], 128  }
   0xc   :  { %926 = vsyncadd [#allocation3], 4294967168  ;;  %v928_v0 = vmov 0.0   ;;  %vm929_vm0 = vmmov 0   ;;  %v50_v1 = vld [vmem:[%s1256_s2 + $0x18] sm:$0xff]  ;;  %v49_v2 = vld [vmem:[%s1256_s2 + $0x10] sm:$0xff]  ;;  %v137_v8 = vlaneseq }
   0xd   :  { %825 = vmatprep.subr.mxu0 %v928_v0  ;;  %833 = vmatprep.mubr.msk.f32.mxu0 %vm929_vm0, %v928_v0  ;;  %v48_v3 = vld [vmem:[%s1256_s2 + $0x8] sm:$0xff]  ;;  %v47_v4 = vld [vmem:[%s1256_s2] sm:$0xff]  ;;  %vm58_vm1 = vcmask 261120   ;;  %v930_v6 = vmov 1966171168   ;;  %vm230_vm2 = vcmask 523264  }
   0xe   :  { %836 = vmatprep.subr.mxu1 %v928_v0  ;;  %852 = vmatprep.mubr.msk.f32.mxu1 %vm929_vm0, %v928_v0  ;;  %v995_v5 = vld [vmem:[#allocation2] sm:$0xff]  ;;  %v135_v7 = vunpack.c.l.s4 %v930_v6  ;;  %v1003_v10 = vshrl.u32 %v137_v8, 7  ;;  %v1021_v27 = vld [vmem:[%s1255_s1 + $0x10] sm:$0xff]  ;;  %v1026_v28 = vld [vmem:[%s1255_s1 + $0x8] sm:$0xff]  ;;  %v264_v62 = vand.u32 127, %v137_v8  ;;  %vm297_vm3 = vcmask 1041409  }
   0xf   :  { %826 = vmatpush3.msra.mxu0 %v50_v1  ;;  %v801_v11 = vld [vmem:[%s1257_s3] ss:$0 sm:$0xff]  ;;  %v1034_v34 = vld [vmem:[%s1255_s1 + $0x18] sm:$0xff]  ;;  %v1052_v47 = vld [vmem:[%s1255_s1 + $0x28] sm:$0xff]  ;;  %vm299_vm4 = vcmask 1042434   ;;  %vm301_vm5 = vcmask 1043459  }
  0x10   :  { %827 = vmatprep.subr.mxu0 %v928_v0  ;;  %v136_v9 = vunpack.c.0.s8 %v135_v7  ;;  %v1010_v18 = vsub.s32 0, %v1003_v10  ;;  %v1015_v22 = vld [vmem:[%s1255_s1] sm:$0xff]  ;;  %v1060_v51 = vld [vmem:[%s1255_s1 + $0x30] sm:$0xff]  ;;  %v1068_v55 = vld [vmem:[%s1255_s1 + $0x38] sm:$0xff]  ;;  %v1077_v1 = vsub.s32 %v264_v62, %v1003_v10  ;;  %vm303_vm6 = vcmask 1044484  }
  0x11   :  { %828 = vmatpush3.msra.mxu0 %v49_v2  ;;  %v1044_v42 = vld [vmem:[%s1255_s1 + $0x20] sm:$0xff]  ;;  %vm305_vm7 = vcmask 1045509   ;;  %vm307_vm8 = vcmask 1046534   ;;  %vm309_vm9 = vcmask 1047559   ;;  %vm312_vm10 = vcmask 64512  }
  0x12   :  { %829 = vmatprep.subr.mxu0 %v928_v0  ;;  %v139_v12 = vsub.s32 %v136_v9, %v1003_v10  ;;  %vm794_vm11 = vcmask 15360  }
  0x13   :  { %830 = vmatpush3.msra.mxu0 %v48_v3 }
  0x14   :  { %831 = vmatprep.subr.mxu0 %v928_v0 }
  0x15   :  { %832 = vmatpush3.msra.mxu0 %v47_v4 }
  0x16   :  { %834 = vmatmul.mubr.msk.f32.vlgmr.msra.gmra.mxu0 %vm58_vm1, %v995_v5  ;;  %855 = vmatprep.subr.mxu0 %v928_v0 }
  0x17   :  { %863 = vmatprep.mubr.msk.f32.mxu0 %vm929_vm0, %v928_v0 }
  0xd6   :  { %v128_v13 = vpop.f32.mrf.mxu0 }
  0xd7   :  { %v129_v14 = vadd.f32 %v801_v11, %v128_v13 }
  0xd8   :  { %v835_v15 = vpop.f32.mrf.mxu0 }
  0xd9   :  { %v133_v16 = vcombine.high %v129_v14, %v129_v14  ;;  %v140_v17 = vrot.slane %v129_v14, %v139_v12 }
  0xdb   :  { %v147_v19 = vrot.slane %v133_v16, %v139_v12  ;;  %v148_v20 = vcombine.high %v140_v17, %v140_v17  ;;  %v156_v21 = vrot.slane %v140_v17, %v139_v12 }
  0xdd   :  { %v149_v23 = vcombine.high %v147_v19, %v147_v19  ;;  %v185_v24 = vrot.slane %v156_v21, %v1010_v18  ;;  %v178_v25 = vcombine.high %v156_v21, %v156_v21  ;;  %v170_v26 = vrot.slane %v148_v20, %v139_v12 }
  0xde   :  { %v163_v29 = vrot.slane %v147_v19, %v139_v12 }
  0xdf   :  { %v222_v30 = vmul.f32 %v185_v24, %v1015_v22  ;;  %v193_v31 = vrot.slane %v178_v25, %v1010_v18  ;;  %v189_v32 = vrot.slane %v170_v26, %v1010_v18  ;;  %v180_v33 = vcombine.high %v170_v26, %v170_v26 }
  0xe0   :  { %v201_v35 = vrot.slane %v163_v29, %v1010_v18  ;;  %v177_v36 = vrot.slane %v149_v23, %v139_v12  ;;  %v179_v37 = vcombine.high %v163_v29, %v163_v29 }
  0xe1   :  { %v231_v38 = vsel %vm230_vm2, %v222_v30, 0.0  ;;  %v224_v39 = vmul.f32 %v193_v31, %v1021_v27  ;;  %v223_v40 = vmul.f32 %v189_v32, %v1026_v28  ;;  %v197_v41 = vrot.slane %v180_v33, %v1010_v18 }
  0xe2   :  { %232 = vadd.xlane.f32.xlu0 %v231_v38  ;;  %v205_v45 = vrot.slane %v177_v36, %v1010_v18  ;;  %v181_v46 = vcombine.high %v177_v36, %v177_v36  ;;  %v226_v49 = vmul.f32 %v201_v35, %v1044_v42  ;;  %v209_v50 = vrot.slane %v179_v37, %v1010_v18 }
  0xe3   :  { %v237_v43 = vsel %vm230_vm2, %v224_v39, 0.0  ;;  %v225_v44 = vmul.f32 %v197_v41, %v1034_v34  ;;  %v234_v48 = vsel %vm230_vm2, %v223_v40, 0.0  ;;  %v931_v31 = vmov 0  }
  0xe4   :  { %238 = vadd.xlane.f32.xlu1 %v237_v43  ;;  %v227_v53 = vmul.f32 %v205_v45, %v1052_v47  ;;  %v213_v54 = vrot.slane %v181_v46, %v1010_v18  ;;  %v243_v56 = vsel %vm230_vm2, %v226_v49, 0.0  ;;  %v228_v57 = vmul.f32 %v209_v50, %v1060_v51  ;;  %872 = vset.pattern.permute.xlu0 %v931_v31 }
  0xe5   :  { %v240_v52 = vsel %vm230_vm2, %v225_v44, 0.0  ;;  %871 = vset.pattern.permute.xlu1 %v931_v31  ;;  %v323_v32 = vsub.s32 1, %v1003_v10  ;;  %v327_v33 = vsub.s32 2, %v1003_v10  ;;  %v331_v35 = vsub.s32 3, %v1003_v10 }
  0xe6   :  { %235 = vadd.xlane.f32.xlu0 %v234_v48  ;;  %v246_v58 = vsel %vm230_vm2, %v227_v53, 0.0  ;;  %v229_v59 = vmul.f32 %v213_v54, %v1068_v55  ;;  %v249_v60 = vsel %vm230_vm2, %v228_v57, 0.0  ;;  %v335_v40 = vsub.s32 4, %v1003_v10 }
  0xe7   :  { %v339_v49 = vsub.s32 5, %v1003_v10  ;;  %v343_v54 = vsub.s32 6, %v1003_v10 }
  0xe8   :  { %241 = vadd.xlane.f32.xlu1 %v240_v52  ;;  %v252_v61 = vsel %vm230_vm2, %v229_v59, 0.0  ;;  %v347_v59 = vsub.s32 7, %v1003_v10 }
  0xea   :  { %244 = vadd.xlane.f32.xlu0 %v243_v56 }
  0xec   :  { %247 = vadd.xlane.f32.xlu1 %v246_v58 }
  0xee   :  { %250 = vadd.xlane.f32.xlu0 %v249_v60 }
  0xf0   :  { %253 = vadd.xlane.f32.xlu1 %v252_v61 }
 0x16b   :  { %v233_v63 = vpop.xlane.xlu0 %232 }
 0x16c   :  { %v268_v4 = vrot.slane %v233_v63, %v1077_v1 }
 0x16d   :  { %v239_v2 = vpop.xlane.xlu1 %238 }
 0x16e   :  { %v276_v7 = vrot.slane %v239_v2, %v1077_v1 }
 0x16f   :  { %v236_v3 = vpop.xlane.xlu0 %235 }
 0x170   :  { %v272_v6 = vrot.slane %v236_v3, %v1077_v1 }
 0x171   :  { %v242_v9 = vpop.xlane.xlu1 %241 }
 0x172   :  { %v298_v11 = vsel %vm297_vm3, %v272_v6, %v268_v4  ;;  %v280_v8 = vrot.slane %v242_v9, %v1077_v1 }
 0x173   :  { %v300_v12 = vsel %vm299_vm4, %v276_v7, %v298_v11  ;;  %v245_v13 = vpop.xlane.xlu0 %244 }
 0x174   :  { %v302_v14 = vsel %vm301_vm5, %v280_v8, %v300_v12  ;;  %v284_v15 = vrot.slane %v245_v13, %v1077_v1 }
 0x175   :  { %v248_v16 = vpop.xlane.xlu1 %247 }
 0x176   :  { %v304_v17 = vsel %vm303_vm6, %v284_v15, %v302_v14  ;;  %v288_v19 = vrot.slane %v248_v16, %v1077_v1 }
 0x177   :  { %v251_v20 = vpop.xlane.xlu0 %250 }
 0x178   :  { %v292_v21 = vrot.slane %v251_v20, %v1077_v1  ;;  %v306_v23 = vsel %vm305_vm7, %v288_v19, %v304_v17 }
 0x179   :  { %v254_v24 = vpop.xlane.xlu1 %253 }
 0x17a   :  { %v296_v25 = vrot.slane %v254_v24, %v1077_v1  ;;  %v308_v26 = vsel %vm307_vm8, %v292_v21, %v306_v23 }
 0x17c   :  { %v310_v29 = vsel %vm309_vm9, %v296_v25, %v308_v26 }
 0x17d   :  { %v313_v30 = vsel %vm312_vm10, %v310_v29, -inf }
 0x17e   :  { %314 = vmax.xlane.f32.xlu0 %v313_v30 }
 0x207   :  { %v315_v36 = vpop.xlane.xlu0 %314 }
 0x208   :  { %v320_v37 = vrot.slane %v315_v36, %v1010_v18  ;;  %v324_v38 = vrot.slane %v315_v36, %v323_v32  ;;  %v328_v39 = vrot.slane %v315_v36, %v327_v33  ;;  %v332_v41 = vrot.slane %v315_v36, %v331_v35 }
 0x209   :  { %v336_v50 = vrot.slane %v315_v36, %v335_v40  ;;  %v340_v56 = vrot.slane %v315_v36, %v339_v49  ;;  %v344_v60 = vrot.slane %v315_v36, %v343_v54 }
 0x20a   :  { %v357_v43 = vsub.f32 %v233_v63, %v320_v37  ;;  %v358_v44 = vsub.f32 %v236_v3, %v324_v38  ;;  %v359_v45 = vsub.f32 %v239_v2, %v328_v39  ;;  %v360_v52 = vsub.f32 %v242_v9, %v332_v41 }
 0x20b   :  { %v361_v57 = vsub.f32 %v245_v13, %v336_v50  ;;  %v362_v61 = vsub.f32 %v248_v16, %v340_v56  ;;  %v348_v63 = vrot.slane %v315_v36, %v347_v59  ;;  %v363_v2 = vsub.f32 %v251_v20, %v344_v60 }
 0x20c   :  { %v365_v46 = vmul.f32 1.442695, %v357_v43  ;;  %v367_v48 = vmul.f32 1.442695, %v358_v44  ;;  %v369_v53 = vmul.f32 1.442695, %v359_v45 }
 0x20d   :  { %v371_v58 = vmul.f32 1.442695, %v360_v52  ;;  %v373_v62 = vmul.f32 1.442695, %v361_v57  ;;  %v375_v3 = vmul.f32 1.442695, %v362_v61  ;;  %v364_v7 = vsub.f32 %v254_v24, %v348_v63 }
 0x20e   :  { %873 = vpow2.f32 %v365_v46  ;;  %v377_v9 = vmul.f32 1.442695, %v363_v2 }
 0x20f   :  { %875 = vpow2.f32 %v367_v48  ;;  %v379_v8 = vmul.f32 1.442695, %v364_v7 }
 0x210   :  { %877 = vpow2.f32 %v369_v53 }
 0x211   :  { %879 = vpow2.f32 %v371_v58 }
 0x212   :  { %881 = vpow2.f32 %v373_v62 }
 0x213   :  { %883 = vpow2.f32 %v375_v3 }
 0x214   :  { %885 = vpow2.f32 %v377_v9 }
 0x215   :  { %887 = vpow2.f32 %v379_v8 }
 0x21b   :  { %v874_v4 = vpop.eup %873 }
 0x21c   :  { %v1117_v6 = vpop.eup %875  ;;  %390 = vperm.xlu1 %871, %v874_v4  }
 0x21d   :  { %393 = vperm.xlu0 %872, %v1117_v6   ;;  %v1120_v11 = vpop.eup %877 }
 0x21e   :  { %v1123_v12 = vpop.eup %879 }
 0x21f   :  { %v1126_v13 = vpop.eup %881 }
 0x220   :  { %396 = vperm.xlu1 %871, %v1120_v11   ;;  %v1129_v14 = vpop.eup %883 }
 0x221   :  { %v1132_v15 = vpop.eup %885 }
 0x222   :  { %v1135_v16 = vpop.eup %887 }
 0x224   :  { %399 = vperm.xlu1 %871, %v1123_v12  }
 0x228   :  { %402 = vperm.xlu1 %871, %v1126_v13  }
 0x22c   :  { %405 = vperm.xlu1 %871, %v1129_v14  }
 0x230   :  { %408 = vperm.xlu1 %871, %v1132_v15  }
 0x234   :  { %411 = vperm.xlu1 %871, %v1135_v16  }
 0x297   :  { %v391_v17 = vpop.permute.xlu1 %390 }
 0x298   :  { %v394_v23 = vpop.permute.xlu0 %393  ;;  %v416_v26 = vrot.slane %v391_v17, %v1077_v1  ;;  %v624_v17 = vld [vmem:[%s1259_s5 + $0x18] sm:$0xff] }
 0x299   :  { %v420_v25 = vrot.slane %v394_v23, %v1077_v1  ;;  %v622_v23 = vld [vmem:[%s1259_s5 + $0x8] sm:$0xff] }
 0x29b   :  { %v397_v19 = vpop.permute.xlu1 %396  ;;  %v445_v37 = vsel %vm297_vm3, %v420_v25, %v416_v26  ;;  %v621_v25 = vld [vmem:[%s1259_s5] sm:$0xff] }
 0x29c   :  { %v424_v29 = vrot.slane %v397_v19, %v1077_v1  ;;  %v619_v19 = vld [vmem:[%s1258_s4 + $0x10] sm:$0xff] }
 0x29e   :  { %v446_v39 = vsel %vm299_vm4, %v424_v29, %v445_v37 }
 0x29f   :  { %v400_v20 = vpop.permute.xlu1 %399 }
 0x2a0   :  { %v428_v30 = vrot.slane %v400_v20, %v1077_v1  ;;  %v623_v20 = vld [vmem:[%s1259_s5 + $0x10] sm:$0xff] }
 0x2a2   :  { %v447_v43 = vsel %vm301_vm5, %v428_v30, %v446_v39 }
 0x2a3   :  { %v403_v21 = vpop.permute.xlu1 %402 }
 0x2a4   :  { %v432_v31 = vrot.slane %v403_v21, %v1077_v1  ;;  %v618_v21 = vld [vmem:[%s1258_s4 + $0x8] sm:$0xff] }
 0x2a6   :  { %v448_v44 = vsel %vm303_vm6, %v432_v31, %v447_v43 }
 0x2a7   :  { %v406_v24 = vpop.permute.xlu1 %405 }
 0x2a8   :  { %v436_v38 = vrot.slane %v406_v24, %v1077_v1  ;;  %v617_v24 = vld [vmem:[%s1258_s4] sm:$0xff] }
 0x2aa   :  { %v449_v46 = vsel %vm305_vm7, %v436_v38, %v448_v44 }
 0x2ab   :  { %v409_v36 = vpop.permute.xlu1 %408 }
 0x2ac   :  { %v440_v41 = vrot.slane %v409_v36, %v1077_v1 }
 0x2ae   :  { %v450_v50 = vsel %vm307_vm8, %v440_v41, %v449_v46 }
 0x2af   :  { %v412_v45 = vpop.permute.xlu1 %411 }
 0x2b0   :  { %v444_v48 = vrot.slane %v412_v45, %v1077_v1 }
 0x2b2   :  { %v451_v52 = vsel %vm309_vm9, %v444_v48, %v450_v50 }
 0x2b3   :  { %v453_v53 = vsel %vm312_vm10, %v451_v52, 0.0 }
 0x2b4   :  { %454 = vadd.xlane.f32.xlu1 %v453_v53 }
 0x33d   :  { %v455_v56 = vpop.xlane.xlu1 %454 }
 0x33e   :  { %v460_v57 = vrot.slane %v455_v56, %v1010_v18  ;;  %v464_v58 = vrot.slane %v455_v56, %v323_v32  ;;  %v468_v60 = vrot.slane %v455_v56, %v327_v33  ;;  %v472_v1 = vrot.slane %v455_v56, %v331_v35 }
 0x33f   :  { %v476_v61 = vrot.slane %v455_v56, %v335_v40  ;;  %v480_v18 = vrot.slane %v455_v56, %v339_v49  ;;  %v484_v33 = vrot.slane %v455_v56, %v343_v54  ;;  %v488_v40 = vrot.slane %v455_v56, %v347_v59 }
 0x340   :  { %889 = vrcp.f32 %v460_v57 }
 0x341   :  { %891 = vrcp.f32 %v464_v58 }
 0x342   :  { %893 = vrcp.f32 %v468_v60 }
 0x343   :  { %895 = vrcp.f32 %v472_v1 }
 0x344   :  { %897 = vrcp.f32 %v476_v61 }
 0x345   :  { %899 = vrcp.f32 %v480_v18 }
 0x346   :  { %901 = vrcp.f32 %v484_v33 }
 0x347   :  { %903 = vrcp.f32 %v488_v40 }
 0x34d   :  { %v890_v62 = vpop.eup %889 }
 0x34e   :  { %v498_v63 = vmul.f32 %v890_v62, %v874_v4  ;;  %v892_v32 = vpop.eup %891 }
 0x34f   :  { %v500_v2 = vmul.f32 %v892_v32, %v1117_v6  ;;  %v894_v35 = vpop.eup %893 }
 0x350   :  { %515 = vperm.xlu0 %872, %v498_v63   ;;  %v502_v3 = vmul.f32 %v894_v35, %v1120_v11  ;;  %v896_v7 = vpop.eup %895 }
 0x351   :  { %v504_v49 = vmul.f32 %v896_v7, %v1123_v12  ;;  %v898_v4 = vpop.eup %897  ;;  %v628_v12 = vld [vmem:[%s1259_s5 + $0x38] sm:$0xff] }
 0x352   :  { %v506_v54 = vmul.f32 %v898_v4, %v1126_v13  ;;  %v900_v9 = vpop.eup %899  ;;  %837 = vmatpush3.msra.mxu1 %v628_v12  ;;  %v627_v13 = vld [vmem:[%s1259_s5 + $0x30] sm:$0xff] }
 0x353   :  { %v508_v6 = vmul.f32 %v900_v9, %v1129_v14  ;;  %v902_v8 = vpop.eup %901  ;;  %838 = vmatprep.subr.mxu1 %v928_v0  ;;  %v626_v14 = vld [vmem:[%s1259_s5 + $0x28] sm:$0xff] }
 0x354   :  { %520 = vperm.xlu0 %872, %v500_v2   ;;  %v510_v10 = vmul.f32 %v902_v8, %v1132_v15  ;;  %v904_v59 = vpop.eup %903  ;;  %839 = vmatpush3.msra.mxu1 %v627_v13  ;;  %v625_v15 = vld [vmem:[%s1259_s5 + $0x20] sm:$0xff] }
 0x355   :  { %v512_v11 = vmul.f32 %v904_v59, %v1135_v16  ;;  %840 = vmatprep.subr.mxu1 %v928_v0  ;;  %v620_v16 = vld [vmem:[%s1258_s4 + $0x18] sm:$0xff] }
 0x356   :  { %841 = vmatpush3.msra.mxu1 %v626_v14  ;;  %856 = vmatpush3.msra.mxu0 %v620_v16 }
 0x357   :  { %842 = vmatprep.subr.mxu1 %v928_v0  ;;  %857 = vmatprep.subr.mxu0 %v928_v0 }
 0x358   :  { %525 = vperm.xlu0 %872, %v502_v3   ;;  %843 = vmatpush3.msra.mxu1 %v625_v15 }
 0x359   :  { %844 = vmatprep.subr.mxu1 %v928_v0  ;;  %858 = vmatpush3.msra.mxu0 %v619_v19 }
 0x35a   :  { %845 = vmatpush3.msra.mxu1 %v624_v17  ;;  %859 = vmatprep.subr.mxu0 %v928_v0 }
 0x35b   :  { %846 = vmatprep.subr.mxu1 %v928_v0  ;;  %860 = vmatpush3.msra.mxu0 %v618_v21 }
 0x35c   :  { %530 = vperm.xlu0 %872, %v504_v49   ;;  %847 = vmatpush3.msra.mxu1 %v623_v20 }
 0x35d   :  { %848 = vmatprep.subr.mxu1 %v928_v0  ;;  %861 = vmatprep.subr.mxu0 %v928_v0 }
 0x35e   :  { %849 = vmatpush3.msra.mxu1 %v622_v23  ;;  %862 = vmatpush3.msra.mxu0 %v617_v24 }
 0x35f   :  { %850 = vmatprep.subr.mxu1 %v928_v0  ;;  %864 = vmatmul.mubr.msk.f32.vlgmr.msra.gmra.mxu0 %vm58_vm1, %v995_v5 }
 0x360   :  { %535 = vperm.xlu0 %872, %v506_v54   ;;  %851 = vmatpush3.msra.mxu1 %v621_v25 }
 0x364   :  { %540 = vperm.xlu0 %872, %v508_v6  }
 0x368   :  { %545 = vperm.xlu0 %872, %v510_v10  }
 0x36c   :  { %550 = vperm.xlu0 %872, %v512_v11  }
 0x3cb   :  { %v516_v26 = vpop.permute.xlu0 %515 }
 0x3cc   :  { %v553_v36 = vmul.f32 %v516_v26, %v1015_v22 }
 0x3ce   :  { %v561_v0 = vsel %vm230_vm2, %v553_v36, 0.0 }
 0x3cf   :  { %v521_v29 = vpop.permute.xlu0 %520  ;;  %v562_v46 = vrot.slane %v561_v0, 4 }
 0x3d0   :  { %v554_v30 = vmul.f32 %v521_v29, %v1026_v28 }
 0x3d1   :  { %v563_v53 = vadd.f32 %v562_v46, %v561_v0 }
 0x3d2   :  { %v568_v38 = vsel %vm230_vm2, %v554_v30, 0.0 }
 0x3d3   :  { %v526_v31 = vpop.permute.xlu0 %525  ;;  %v569_v5 = vrot.slane %v568_v38, 4  ;;  %v564_v18 = vrot.slane %v563_v53, 2 }
 0x3d4   :  { %v555_v37 = vmul.f32 %v526_v31, %v1021_v27 }
 0x3d5   :  { %v570_v50 = vadd.f32 %v569_v5, %v568_v38  ;;  %v565_v49 = vadd.f32 %v564_v18, %v563_v53 }
 0x3d6   :  { %v575_v39 = vsel %vm230_vm2, %v555_v37, 0.0 }
 0x3d7   :  { %v531_v41 = vpop.permute.xlu0 %530  ;;  %v576_v44 = vrot.slane %v575_v39, 4 }
 0x3d8   :  { %v556_v43 = vmul.f32 %v531_v41, %v1034_v34  ;;  %v571_v34 = vrot.slane %v570_v50, 2 }
 0x3d9   :  { %v577_v27 = vadd.f32 %v576_v44, %v575_v39 }
 0x3da   :  { %v582_v45 = vsel %vm230_vm2, %v556_v43, 0.0  ;;  %v572_v35 = vadd.f32 %v571_v34, %v570_v50  ;;  %v805_v50 = vld [vmem:[%s1260_s6] ss:$0 sm:$0xff] }
 0x3db   :  { %v583_v28 = vrot.slane %v582_v45, 4  ;;  %v536_v48 = vpop.permute.xlu0 %535  ;;  %v578_v61 = vrot.slane %v577_v27, 2 }
 0x3dc   :  { %v557_v22 = vmul.f32 %v536_v48, %v1044_v42  ;;  %v573_v10 = vrot.slane %v572_v35, 1 }
 0x3dd   :  { %v584_v56 = vadd.f32 %v583_v28, %v582_v45  ;;  %v579_v3 = vadd.f32 %v578_v61, %v577_v27 }
 0x3de   :  { %v589_v52 = vsel %vm230_vm2, %v557_v22, 0.0  ;;  %v574_v19 = vadd.f32 %v573_v10, %v572_v35 }
 0x3df   :  { %v590_v57 = vrot.slane %v589_v52, 4  ;;  %v541_v58 = vpop.permute.xlu0 %540  ;;  %v585_v63 = vrot.slane %v584_v56, 2  ;;  %v580_v12 = vrot.slane %v579_v3, 1 }
 0x3e0   :  { %v558_v60 = vmul.f32 %v541_v58, %v1052_v47 }
 0x3e1   :  { %v591_v1 = vadd.f32 %v590_v57, %v589_v52  ;;  %v586_v4 = vadd.f32 %v585_v63, %v584_v56  ;;  %v581_v24 = vadd.f32 %v580_v12, %v579_v3 }
 0x3e2   :  { %v596_v62 = vsel %vm230_vm2, %v558_v60, 0.0 }
 0x3e3   :  { %v597_v32 = vrot.slane %v596_v62, 4  ;;  %v546_v33 = vpop.permute.xlu0 %545  ;;  %v592_v42 = vrot.slane %v591_v1, 2  ;;  %v587_v14 = vrot.slane %v586_v4, 1 }
 0x3e4   :  { %v559_v2 = vmul.f32 %v546_v33, %v1060_v51  ;;  %v566_v51 = vrot.slane %v565_v49, 1 }
 0x3e5   :  { %v598_v40 = vadd.f32 %v597_v32, %v596_v62  ;;  %v593_v6 = vadd.f32 %v592_v42, %v591_v1  ;;  %v588_v26 = vadd.f32 %v587_v14, %v586_v4 }
 0x3e6   :  { %v603_v7 = vsel %vm230_vm2, %v559_v2, 0.0  ;;  %v567_v25 = vadd.f32 %v566_v51, %v565_v49 }
 0x3e7   :  { %v599_v47 = vrot.slane %v598_v40, 2  ;;  %v604_v54 = vrot.slane %v603_v7, 4  ;;  %v551_v9 = vpop.permute.xlu0 %550  ;;  %v594_v17 = vrot.slane %v593_v6, 1 }
 0x3e8   :  { %v560_v8 = vmul.f32 %v551_v9, %v1068_v55  ;;  %v637_v31 = vsel %vm297_vm3, %v574_v19, %v567_v25 }
 0x3e9   :  { %v600_v59 = vadd.f32 %v599_v47, %v598_v40  ;;  %v605_v11 = vadd.f32 %v604_v54, %v603_v7  ;;  %v595_v30 = vadd.f32 %v594_v17, %v593_v6  ;;  %v638_v38 = vsel %vm299_vm4, %v581_v24, %v637_v31 }
 0x3ea   :  { %v610_v13 = vsel %vm230_vm2, %v560_v8, 0.0  ;;  %v639_v41 = vsel %vm301_vm5, %v588_v26, %v638_v38 }
 0x3eb   :  { %v606_v15 = vrot.slane %v605_v11, 2  ;;  %v611_v16 = vrot.slane %v610_v13, 4  ;;  %v601_v20 = vrot.slane %v600_v59, 1  ;;  %v640_v43 = vsel %vm303_vm6, %v595_v30, %v639_v41 }
 0x3ed   :  { %v607_v21 = vadd.f32 %v606_v15, %v605_v11  ;;  %v612_v23 = vadd.f32 %v611_v16, %v610_v13  ;;  %v602_v36 = vadd.f32 %v601_v20, %v600_v59 }
 0x3ef   :  { %v608_v29 = vrot.slane %v607_v21, 1  ;;  %v613_v55 = vrot.slane %v612_v23, 2  ;;  %v641_v44 = vsel %vm305_vm7, %v602_v36, %v640_v43 }
 0x3f1   :  { %v614_v37 = vadd.f32 %v613_v55, %v612_v23  ;;  %v609_v39 = vadd.f32 %v608_v29, %v607_v21 }
 0x3f3   :  { %v615_v0 = vrot.slane %v614_v37, 1  ;;  %v642_v45 = vsel %vm307_vm8, %v609_v39, %v641_v44 }
 0x3f5   :  { %v616_v5 = vadd.f32 %v615_v0, %v614_v37 }
 0x3f7   :  { %v643_v46 = vsel %vm309_vm9, %v616_v5, %v642_v45 }
 0x3f8   :  { %853 = vmatmul.mubr.msk.f32.vlgmr.msra.gmra.mxu1 %vm230_vm2, %v643_v46 }
 0x41f   :  { %v782_v28 = vpop.f32.mrf.mxu0 }
 0x421   :  { %v865_v48 = vpop.f32.mrf.mxu0 }
 0x4b8   :  { %v712_v22 = vpop.f32.mrf.mxu1 }
 0x4b9   :  { %v783_v27 = vadd.f32 %v782_v28, %v712_v22 }
 0x4ba   :  { %v854_v52 = vpop.f32.mrf.mxu1 }
 0x4bb   :  { %v793_v53 = vadd.f32 %v805_v50, %v783_v27 }
 0x4bd   :  { %795 = vst.msk [vmem:[%s1261_s7] sm:$0xff] %vm794_vm11, %v793_v53 }
 0x4be   :  { %800 = vsyncpa [#allocation3], 1 }

</bundles_post_ra>
